<compile_context>
chip_gen: v7x
topology: tpu7x:2x2x1
jax: 0.10.0
libtpu: 0.0.40
codegen_flags: <defaults>
</compile_context>

<pallas_src>
import functools
import math

import jax
import jax.numpy as jnp
from jax.experimental import pallas as pl
from jax.experimental.pallas import tpu as pltpu


# ----------------------------------------------------------------------------- table


def make_positional_encoding_table(d_model: int, max_length: int = 5000) -> jnp.ndarray:
    """Same construction as the PyTorch buffer 'pe', squeezed to [max_length, d_model]."""
    if d_model % 2 != 0:
        raise ValueError("d_model must be even (matches the PyTorch module's sin/cos split)")
    position = jnp.arange(0, max_length, dtype=jnp.float32)[:, None]              # [L, 1]
    div_term = jnp.exp(jnp.arange(0, d_model, 2, dtype=jnp.float32)
                       * (-math.log(10000.0) / d_model))                          # [d_model/2]
    pe = jnp.zeros((max_length, d_model), dtype=jnp.float32)
    pe = pe.at[:, 0::2].set(jnp.sin(position * div_term))
    pe = pe.at[:, 1::2].set(jnp.cos(position * div_term))
    return pe


# ---------------------------------------------------------------------------- kernels
# All kernels see x/out as (block_seq, batch*d_model) and pe as (block_seq, d_model).
# Each batch element occupies a contiguous, statically addressed lane slice
# [b*d_model : (b+1)*d_model], so the pe add needs no expanded temp.


def _pos_enc_kernel(x_ref, pe_ref, o_ref, *, batch, d_model):
    pe = pe_ref[...]
    for b in range(batch):
        sl = slice(b * d_model, (b + 1) * d_model)
        o_ref[:, sl] = (x_ref[:, sl] + pe).astype(o_ref.dtype)


def _pos_enc_dropout_prng_kernel(x_ref, pe_ref, seed_ref, o_ref, *,
                                 batch, d_model, dropout_p):
    # In-kernel inverted dropout: draw the mask with the TPU hardware PRNG so no
    # mask array is ever streamed from HBM.  One independent draw per grid step.
    pltpu.prng_seed(seed_ref[0] + pl.program_id(0))
    scale = 1.0 / (1.0 - dropout_p)
    thresh = jnp.uint32(min(int(round(dropout_p * 2.0 ** 32)), 2 ** 32 - 1))
    pe = pe_ref[...].astype(jnp.float32)
    for b in range(batch):
        sl = slice(b * d_model, (b + 1) * d_model)
        y = x_ref[:, sl].astype(jnp.float32) + pe
        bits = pltpu.bitcast(pltpu.prng_random_bits(y.shape), jnp.uint32)
        keep = bits >= thresh                       # P(keep) = 1 - dropout_p
        o_ref[:, sl] = jnp.where(keep, y * scale, 0.0).astype(o_ref.dtype)


def _pos_enc_dropout_mask_kernel(x_ref, pe_ref, m_ref, o_ref, *,
                                 batch, d_model, scale):
    # Streamed 1-byte keep-mask (interpret-mode-friendly); 1/(1-p) scale is applied
    # in-kernel so the wrapper never materializes a pre-scaled f32 mask.
    pe = pe_ref[...].astype(jnp.float32)
    for b in range(batch):
        sl = slice(b * d_model, (b + 1) * d_model)
        y = x_ref[:, sl].astype(jnp.float32) + pe
        keep = m_ref[:, sl] != 0
        o_ref[:, sl] = jnp.where(keep, y * scale, 0.0).astype(o_ref.dtype)


# ---------------------------------------------------------------------------- tiling


def _choose_block_seq(seq_len, row_bytes, *,
                      target_tile_bytes=4 << 20,       # ~4 MiB x-tile (good v5e..v7x)
                      split_threshold_bytes=8 << 20):
    """Seq-tile size: multiple of 32 sublanes (covers f32 and int8-mask tiling),
    ~4 MiB per x tile, >=4 grid steps for big inputs (>=2 per v7x TensorCore so
    double-buffering still overlaps), and no splitting at all for tiny inputs
    where the ~0.35us per-step overhead would dominate."""
    if seq_len * row_bytes <= split_threshold_bytes:
        return seq_len                               # single full-extent block
    bs = max(32, (target_tile_bytes // row_bytes) // 32 * 32)
    four_way = max(32, (seq_len // 4) // 32 * 32)    # guarantee >=4 steps
    # TODO(synk): extremely wide rows (batch*d_model*itemsize >> 4 MiB) would need
    # lane-axis tiling as well; not needed for typical transformer shapes.
    return min(bs, four_way, seq_len)


# ---------------------------------------------------------------------------- wrapper


def positional_encoding(x: jnp.ndarray,
                        pe: jnp.ndarray,
                        *,
                        dropout_p: float = 0.1,
                        training: bool = False,
                        rng_key=None,
                        use_tpu_prng: bool = True) -> jnp.ndarray:
    """Forward pass of the PyTorch PositionalEncoding module.

    x:  [seq_len, batch, d_model]
    pe: [max_length, d_model] float32 table (see make_positional_encoding_table).
    """
    seq_len, batch, d_model = x.shape
    width = batch * d_model
    itemsize = x.dtype.itemsize
    pe_slice = pe[:seq_len].astype(x.dtype)          # small; cast once in the wrapper

    # Free row-major view: seq on sublanes, batch*d_model lane-dense.
    # (If d_model is not a multiple of 128 the per-batch lane slices become
    #  unaligned -> correct but slower masked stores.)
    x2 = x.reshape(seq_len, width)

    block_seq = _choose_block_seq(seq_len, width * itemsize)
    grid = (pl.cdiv(seq_len, block_seq),)

    x_spec = pl.BlockSpec((block_seq, width), lambda i: (i, 0))
    pe_spec = pl.BlockSpec((block_seq, d_model), lambda i: (i, 0))

    apply_dropout = bool(training) and dropout_p > 0.0
    if apply_dropout and rng_key is None:
        raise ValueError("training=True with dropout_p>0 requires an explicit rng_key")

    n_elems = seq_len * width
    mask_tile_bytes = 0
    if not apply_dropout:
        kernel = functools.partial(_pos_enc_kernel, batch=batch, d_model=d_model)
        in_specs = [x_spec, pe_spec]
        operands = (x2, pe_slice)
        flops = n_elems
        extra_bytes = 0
    elif use_tpu_prng:
        # Default fast path: mask drawn in-kernel with the TPU PRNG.
        seed = jax.random.randint(rng_key, (1,), minval=0,
                                  maxval=jnp.iinfo(jnp.int32).max, dtype=jnp.int32)
        kernel = functools.partial(_pos_enc_dropout_prng_kernel,
                                   batch=batch, d_model=d_model,
                                   dropout_p=float(dropout_p))
        in_specs = [x_spec, pe_spec, pl.BlockSpec(memory_space=pltpu.MemorySpace.SMEM)]
        operands = (x2, pe_slice, seed)
        flops = 3 * n_elems
        extra_bytes = 0
    else:
        # Interpret-mode-parity path: 1-byte keep mask streamed, scaled in-kernel.
        keep = jax.random.bernoulli(rng_key, 1.0 - dropout_p, (seq_len, batch, d_model))
        mask = keep.reshape(seq_len, width).astype(jnp.int8)
        mask_spec = pl.BlockSpec((block_seq, width), lambda i: (i, 0))
        kernel = functools.partial(_pos_enc_dropout_mask_kernel,
                                   batch=batch, d_model=d_model,
                                   scale=1.0 / (1.0 - float(dropout_p)))
        in_specs = [x_spec, pe_spec, mask_spec]
        operands = (x2, pe_slice, mask)
        flops = 3 * n_elems
        extra_bytes = n_elems                        # int8 mask stream
        mask_tile_bytes = block_seq * width

    # Explicit scoped-VMEM budget: in + out + (mask) double-buffered, plus pe tiles.
    x_tile = block_seq * width * itemsize
    pe_tile = block_seq * d_model * itemsize
    need = 2 * (2 * x_tile + pe_tile + mask_tile_bytes)
    vmem_limit = int(min(64 << 20, max(16 << 20, need + (4 << 20))))

    cost = pl.CostEstimate(
        flops=int(flops),
        transcendentals=0,
        bytes_accessed=int(2 * n_elems * itemsize + seq_len * d_model * itemsize + extra_bytes),
    )

    out2 = pl.pallas_call(
        kernel,
        out_shape=jax.ShapeDtypeStruct((seq_len, width), x.dtype),
        grid_spec=pl.GridSpec(grid=grid, in_specs=in_specs, out_specs=x_spec),
        compiler_params=pltpu.CompilerParams(
            dimension_semantics=("parallel",),
            vmem_limit_bytes=vmem_limit,
        ),
        input_output_aliases={0: 0},     # out has x's shape/dtype; lets XLA reuse x's buffer
        cost_estimate=cost,
    )(*operands)
    return out2.reshape(seq_len, batch, d_model)


# ------------------------------------------------------------------------------ main


if __name__ == "__main__":
    # Small shapes consistent with the module's forward: x is [seq_len, batch, d_model].
    seq_len, batch, d_model = 64, 2, 128
    max_length, dropout_p = 128, 0.1

    key = jax.random.PRNGKey(0)
    kx, kd = jax.random.split(key)
    x = jax.random.normal(kx, (seq_len, batch, d_model), dtype=jnp.float32)
    pe = make_positional_encoding_table(d_model, max_length)
    ref = x + pe[:seq_len][:, None, :]

    # Eval-mode forward (dropout is identity).
    out_eval = jax.block_until_ready(
        positional_encoding(x, pe, dropout_p=dropout_p, training=False))
    assert out_eval.shape == (seq_len, batch, d_model)
    assert jnp.allclose(out_eval, ref, atol=1e-6, rtol=1e-6)

    # Training forward, deterministic streamed-mask path so it verifies bit-for-bit
    # in both compiled and interpret runs.
    # TODO(synk): the default use_tpu_prng=True path (in-kernel pltpu PRNG, zero mask
    # HBM traffic) is the production training path; exercise it on real-TPU-only CI.
    out_train = jax.block_until_ready(
        positional_encoding(x, pe, dropout_p=dropout_p, training=True,
                            rng_key=kd, use_tpu_prng=False))
    keep = jax.random.bernoulli(kd, 1.0 - dropout_p, (seq_len, batch, d_model))
    ref_train = jnp.where(keep, ref * (1.0 / (1.0 - dropout_p)), 0.0)
    assert out_train.shape == (seq_len, batch, d_model)
    assert jnp.allclose(out_train, ref_train, atol=1e-5, rtol=1e-5)

    print("KERNEL_OK")
</pallas_src>

<mosaic_0001>
module attributes {stable_mosaic.version = 11 : i64} {
  func.func @_pos_enc_kernel(%arg0: i32, %arg1: memref<64x256xf32, #tpu.memory_space<vmem>>, %arg2: memref<64x128xf32, #tpu.memory_space<vmem>>, %arg3: memref<64x256xf32, #tpu.memory_space<vmem>>) attributes {dimension_semantics = [#tpu.dimension_semantics<parallel>], iteration_bounds = array<i64: 1>, scalar_prefetch = 0 : i64, scratch_operands = 0 : i64, tpu.core_type = #tpu.core_type<tc>, window_params = [{transform_indices = @transform_0, window_bounds = array<i64: 64, 256>}, {transform_indices = @transform_1, window_bounds = array<i64: 64, 128>}, {transform_indices = @transform_2, window_bounds = array<i64: 64, 256>}]} {
    %c0 = arith.constant 0 : index
    %c0_0 = arith.constant 0 : index
    %0 = vector.load %arg2[%c0, %c0_0] : memref<64x128xf32, #tpu.memory_space<vmem>>, vector<64x128xf32>
    %c0_1 = arith.constant 0 : index
    %c0_2 = arith.constant 0 : index
    %1 = vector.load %arg1[%c0_1, %c0_2] : memref<64x256xf32, #tpu.memory_space<vmem>>, vector<64x128xf32>
    %2 = arith.addf %1, %0 : vector<64x128xf32>
    %c0_3 = arith.constant 0 : index
    %c0_4 = arith.constant 0 : index
    %3 = vector.load %arg3[%c0_3, %c0_4] : memref<64x256xf32, #tpu.memory_space<vmem>>, vector<64x128xf32>
    tpu.vector_store %arg3[%c0_3, %c0_4], %2 {strides = array<i32>} : memref<64x256xf32, #tpu.memory_space<vmem>>, vector<64x128xf32>,
    %c0_5 = arith.constant 0 : index
    %c128 = arith.constant 128 : index
    %4 = vector.load %arg1[%c0_5, %c128] : memref<64x256xf32, #tpu.memory_space<vmem>>, vector<64x128xf32>
    %5 = arith.addf %4, %0 : vector<64x128xf32>
    %c0_6 = arith.constant 0 : index
    %c128_7 = arith.constant 128 : index
    %6 = vector.load %arg3[%c0_6, %c128_7] : memref<64x256xf32, #tpu.memory_space<vmem>>, vector<64x128xf32>
    tpu.vector_store %arg3[%c0_6, %c128_7], %5 {strides = array<i32>} : memref<64x256xf32, #tpu.memory_space<vmem>>, vector<64x128xf32>,
    return
  }
  func.func @transform_0(%arg0: i32) -> (i32, i32) {
    %c0_i32 = arith.constant 0 : i32
    %c0_i32_0 = arith.constant 0 : i32
    return %arg0, %c0_i32 : i32, i32
  }
  func.func @transform_1(%arg0: i32) -> (i32, i32) {
    %c0_i32 = arith.constant 0 : i32
    %c0_i32_0 = arith.constant 0 : i32
    return %arg0, %c0_i32 : i32, i32
  }
  func.func @transform_2(%arg0: i32) -> (i32, i32) {
    %c0_i32 = arith.constant 0 : i32
    %c0_i32_0 = arith.constant 0 : i32
    return %arg0, %c0_i32 : i32, i32
  }
}

</mosaic_0001>

<bundles_post_ra>
// kernel: tpu_custom_call.1
= control target key start
LH: loop header
LB: loop body
LE: loop exit
PB: predicated region body
PF: predicated region fallthrough
CT: control target
= control target key end

     0   :  { %7 = vsyncpa [#allocation3], 0  ;;  %s224_s0 = inlined_call_operand.hbm [shape: f32[64,256], index: 0, kind: input, shape index: {}, may-alias: {0,2}]   ;;  %s225_s1 = inlined_call_operand.vmem [shape: f32[64,128], index: 1, kind: input, shape index: {}]   ;;  %s226_s2 = inlined_call_operand.hbm [shape: f32[64,256], index: 2, kind: output, shape index: {}, may-alias: {0,2}]  }
   0x1   :  { %8 = vsyncpa [#allocation4], 0  ;;  %s151_s9 = smov [#allocation2]   ;;  %s103_s13 = scalar_lea.hbm %s224_s0, 2048 }
   0x2   :  { %s14_s10 = sshll.u32 %s151_s9, 4  ;;  %p104_p0 = scmp.ne.s32.totalorder %s224_s0, %s103_s13  ;;  %s15_s10 = int_to_ptr.vmem [resolvable:$true] %s14_s10 }
   0x3   :  { %p107_p1 = scmp.lt.u32.totalorder %s103_s13, %s224_s0 }
   0x5   :  { %p109_p2 = pnand %p107_p1, %p104_p0 }
   0x7   :  { %112 = shalt.err (!%p109_p2)
}
   0x8   :  { %s113_s18 = scalar_lea.vmem %s15_s10, 2048  ;;  %p118_p4 = scmp.lt.s32.totalorder %s15_s10, %s15_s10 }
   0x9   :  { %p114_p3 = scmp.ne.s32.totalorder %s15_s10, %s113_s18  ;;  %p119_p5 = scmp.lt.s32.totalorder %s113_s18, %s113_s18 }
   0xb   :  { %p120_p6 = por %p119_p5, %p118_p4 }
   0xd   :  { %p121_p7 = pnand %p120_p6, %p114_p3 }
   0xf   :  { %124 = shalt.err (!%p121_p7)
}
  0x10   :  { %s152_s19 = smov 256   ;;  %s153_s20 = smov 16  }
  0x11   :  { %20 = dma.hbm_to_vmem [thread:$0]  %s224_s0, 2048, %s15_s10, [#allocation3], %s152_s19, %s152_s19, %s153_s20  }
  0x12   :  { %147 = dma.done.wait [#allocation3], 2048  }
  0x13   :  { %148 = vsyncadd [#allocation3], 4294965248  ;;  %v26_v0 = vld [vmem:[%s225_s1] sm:$0xff]  ;;  %v27_v2 = vld [vmem:[%s225_s1 + $0x8] sm:$0xff]  ;;  %s154_s10 = smov [#allocation5]  }
  0x14   :  { %v34_v1 = vld [vmem:[#allocation2] sm:$0xff]  ;;  %v35_v4 = vld [vmem:[#allocation2 + $0x10] sm:$0xff]  ;;  %v29_v9 = vld [vmem:[%s225_s1 + $0x18] sm:$0xff]  ;;  %s87_s11 = sshll.u32 %s154_s10, 4  ;;  %s88_s11 = int_to_ptr.vmem [resolvable:$true] %s87_s11 }
  0x15   :  { %v42_v3 = vadd.f32 %v34_v1, %v26_v0  ;;  %v28_v5 = vld [vmem:[%s225_s1 + $0x10] sm:$0xff]  ;;  %v36_v6 = vld [vmem:[#allocation2 + $0x20] sm:$0xff]  ;;  %v43_v7 = vadd.f32 %v35_v4, %v27_v2  ;;  %v31_v14 = vld [vmem:[%s225_s1 + $0x28] sm:$0xff]  ;;  %p130_p9 = scmp.lt.s32.totalorder %s88_s11, %s88_s11 }
  0x16   :  { %v44_v8 = vadd.f32 %v36_v6, %v28_v5  ;;  %v37_v10 = vld [vmem:[#allocation2 + $0x30] sm:$0xff]  ;;  %v30_v11 = vld [vmem:[%s225_s1 + $0x20] sm:$0xff]  ;;  %v33_v20 = vld [vmem:[%s225_s1 + $0x38] sm:$0xff] }
  0x17   :  { %50 = vst [vmem:[#allocation5] sm:$0xff] %v42_v3  ;;  %v45_v12 = vadd.f32 %v37_v10, %v29_v9  ;;  %v38_v13 = vld [vmem:[#allocation2 + $0x40] sm:$0xff]  ;;  %v39_v15 = vld [vmem:[#allocation2 + $0x50] sm:$0xff]  ;;  %51 = vst [vmem:[#allocation5 + $0x10] sm:$0xff] %v43_v7 }
  0x18   :  { %52 = vst [vmem:[#allocation5 + $0x20] sm:$0xff] %v44_v8  ;;  %v46_v16 = vadd.f32 %v38_v13, %v30_v11  ;;  %v47_v17 = vadd.f32 %v39_v15, %v31_v14  ;;  %v32_v18 = vld [vmem:[%s225_s1 + $0x30] sm:$0xff]  ;;  %v40_v19 = vld [vmem:[#allocation2 + $0x60] sm:$0xff]  ;;  %v58_v23 = vld [vmem:[#allocation2 + $0x8] sm:$0xff]  ;;  %s125_s1 = scalar_lea.vmem %s88_s11, 2048 }
  0x19   :  { %53 = vst [vmem:[#allocation5 + $0x30] sm:$0xff] %v45_v12  ;;  %v48_v21 = vadd.f32 %v40_v19, %v32_v18  ;;  %v41_v22 = vld [vmem:[#allocation2 + $0x70] sm:$0xff]  ;;  %v59_v24 = vld [vmem:[#allocation2 + $0x18] sm:$0xff]  ;;  %v66_v26 = vadd.f32 %v58_v23, %v26_v0  ;;  %v60_v28 = vld [vmem:[#allocation2 + $0x28] sm:$0xff]  ;;  %p126_p8 = scmp.ne.s32.totalorder %s88_s11, %s125_s1  ;;  %p131_p10 = scmp.lt.s32.totalorder %s125_s1, %s125_s1 }
  0x1a   :  { %54 = vst [vmem:[#allocation5 + $0x40] sm:$0xff] %v46_v16  ;;  %55 = vst [vmem:[#allocation5 + $0x50] sm:$0xff] %v47_v17  ;;  %v49_v25 = vadd.f32 %v41_v22, %v33_v20  ;;  %v67_v27 = vadd.f32 %v59_v24, %v27_v2  ;;  %v61_v29 = vld [vmem:[#allocation2 + $0x38] sm:$0xff]  ;;  %v62_v30 = vld [vmem:[#allocation2 + $0x48] sm:$0xff]  ;;  %v68_v31 = vadd.f32 %v60_v28, %v28_v5 }
  0x1b   :  { %56 = vst [vmem:[#allocation5 + $0x60] sm:$0xff] %v48_v21  ;;  %v69_v32 = vadd.f32 %v61_v29, %v29_v9  ;;  %v70_v33 = vadd.f32 %v62_v30, %v30_v11  ;;  %v63_v34 = vld [vmem:[#allocation2 + $0x58] sm:$0xff]  ;;  %v64_v35 = vld [vmem:[#allocation2 + $0x68] sm:$0xff]  ;;  %74 = vst [vmem:[#allocation5 + $0x8] sm:$0xff] %v66_v26  ;;  %p132_p11 = por %p131_p10, %p130_p9 }
  0x1c   :  { %v65_v36 = vld [vmem:[#allocation2 + $0x78] sm:$0xff]  ;;  %57 = vst [vmem:[#allocation5 + $0x70] sm:$0xff] %v49_v25  ;;  %75 = vst [vmem:[#allocation5 + $0x18] sm:$0xff] %v67_v27  ;;  %v71_v37 = vadd.f32 %v63_v34, %v31_v14  ;;  %v72_v38 = vadd.f32 %v64_v35, %v32_v18 }
  0x1d   :  { %v73_v39 = vadd.f32 %v65_v36, %v33_v20  ;;  %76 = vst [vmem:[#allocation5 + $0x28] sm:$0xff] %v68_v31  ;;  %77 = vst [vmem:[#allocation5 + $0x38] sm:$0xff] %v69_v32  ;;  %p133_p12 = pnand %p132_p11, %p126_p8 }
  0x1e   :  { %78 = vst [vmem:[#allocation5 + $0x48] sm:$0xff] %v70_v33  ;;  %79 = vst [vmem:[#allocation5 + $0x58] sm:$0xff] %v71_v37 }
  0x1f   :  { %80 = vst [vmem:[#allocation5 + $0x68] sm:$0xff] %v72_v38  ;;  %81 = vst [vmem:[#allocation5 + $0x78] sm:$0xff] %v73_v39 }
  0x20   :  { %136 = shalt.err (!%p133_p12)
}
  0x21   :  { %s137_s14 = scalar_lea.hbm %s226_s2, 2048 }
  0x22   :  { %p138_p13 = scmp.ne.s32.totalorder %s226_s2, %s137_s14  ;;  %p141_p0 = scmp.lt.u32.totalorder %s137_s14, %s226_s2 }
  0x24   :  { %p143_p1 = pnand %p141_p0, %p138_p13 }
  0x26   :  { %146 = shalt.err (!%p143_p1)
}
  0x27   :  { %93 = dma.vmem_to_hbm [thread:$0]  %s88_s11, 2048, %s226_s2, [#allocation4], %s152_s19, %s152_s19, %s153_s20  }
  0x28   :  { %149 = dma.done.wait [#allocation4], 2048  }
  0x29   :  { %150 = vsyncadd [#allocation4], 4294965248 }
  0x2a   :  { %97 = vsyncpa [#allocation3], 1 }
  0x2b   :  { %98 = vsyncpa [#allocation4], 1 }

</bundles_post_ra>
